<compile_context>
chip_gen: v5e
topology: v5e:2x2
jax: 0.10.0
libtpu: 0.0.40
codegen_flags: <defaults>
</compile_context>

<pallas_src>
import jax
import jax.numpy as jnp
from jax.experimental import pallas as pl
from jax.experimental.pallas import tpu as pltpu

B = 8                      # batch
NUM_FEAT = 4               # numerical features (MVN dimension)
CAT_FEAT = (3, 2)          # categorical feature cardinalities
SUM_CAT = sum(CAT_FEAT)
HIDDEN = 32                # synthetic model hidden width
D_OUT = NUM_FEAT + SUM_CAT + 1
OUT_W = 128                # lane-dense fused output width (one full lane tile)
TASK = "regression"


def _round_up(n, m):
    return ((n + m - 1) // m) * m


def _gm_kernel(xa_ref, w1_ref, w2_ref, out_ref):
    # xa = [x_t | t | 1]: the first matmul folds the t-broadcast and layer-1 bias.
    h = jnp.tanh(jnp.dot(xa_ref[...], w1_ref[...],
                         preferred_element_type=jnp.float32))
    # One MXU pass produces [res (128 lanes) | denominators (128 lanes)];
    # the trailing row of w2_ref is the packed (already augmented) bias.
    res_den = (jnp.dot(h, w2_ref[0:HIDDEN, :],
                       preferred_element_type=jnp.float32)
               + w2_ref[HIDDEN:HIDDEN + 1, :])
    res = res_den[:, 0:OUT_W]
    den = res_den[:, OUT_W:2 * OUT_W]   # per-group sums under the cat columns,
                                        # exactly 1.0 everywhere else
    # Categorical(probs) normalization. Pass-through lanes divide by exactly 1.0,
    # so mu / target-loc columns are bit-exact; the divide lowers to the EUP
    # reciprocal path on TPU. (As in the torch module, no epsilon clamp is added.)
    out_ref[...] = res / den


def _group_matrix():
    g = jnp.zeros((SUM_CAT, SUM_CAT), jnp.float32)
    off = 0
    for v in CAT_FEAT:
        g = g.at[off:off + v, off:off + v].set(1.0)
        off += v
    return g


def _pack_weights(params):
    """Trace-time weight folding (plain JAX, fused by XLA outside the kernel)."""
    w1x, w1t, b1, w2, b2 = params
    # Layer 1: concat(x, t, 1) @ [w1x ; w1t ; b1]
    w1_pack = jnp.concatenate([w1x, w1t, b1], axis=0).astype(jnp.float32)   # (F+2, H)

    # Layer 2, "main" half -> res columns (zero-padded to 128 lanes).
    main_w = jnp.zeros((HIDDEN, OUT_W), jnp.float32).at[:, :D_OUT].set(w2)
    main_b = jnp.zeros((1, OUT_W), jnp.float32).at[:, :D_OUT].set(b2)
    # "Denominator" half -> per-group sums aligned under the cat columns, 1.0 elsewhere.
    den_w = jnp.zeros((HIDDEN, OUT_W), jnp.float32)
    den_b = jnp.ones((1, OUT_W), jnp.float32)
    if SUM_CAT:
        g = _group_matrix()
        den_w = den_w.at[:, NUM_FEAT:NUM_FEAT + SUM_CAT].set(
            w2[:, NUM_FEAT:NUM_FEAT + SUM_CAT] @ g)
        den_b = den_b.at[:, NUM_FEAT:NUM_FEAT + SUM_CAT].set(
            b2[:, NUM_FEAT:NUM_FEAT + SUM_CAT] @ g)
    w2_pack = jnp.concatenate(
        [jnp.concatenate([main_w, den_w], axis=1),
         jnp.concatenate([main_b, den_b], axis=1)], axis=0)                 # (H+1, 256)
    return w1_pack.astype(jnp.float32), w2_pack.astype(jnp.float32)


def gaussian_multinomial_forward(x_t, t, params):
    """Returns ((mu, sigma), [cat_probs...], target_params) mirroring the torch forward."""
    b = x_t.shape[0]
    x_t = x_t.astype(jnp.float32)
    t = t.astype(jnp.float32).reshape(b, 1)
    w1_pack, w2_pack = _pack_weights(params)

    # Model input: concat(x_t, t, 1) so the kernel is exactly two dense matmuls.
    xa = jnp.concatenate([x_t, t, jnp.ones((b, 1), jnp.float32)], axis=1)

    block_b = min(256, _round_up(b, 8))          # MXU-friendly batch tile
    b_pad = _round_up(b, block_b)
    if b_pad != b:
        xa = jnp.zeros((b_pad, xa.shape[1]), jnp.float32).at[:b].set(xa)

    fused = pl.pallas_call(
        _gm_kernel,
        grid=(b_pad // block_b,),
        in_specs=[
            pl.BlockSpec((block_b, NUM_FEAT + 2), lambda i: (i, 0)),
            pl.BlockSpec(w1_pack.shape, lambda i: (0, 0)),   # weights stay resident
            pl.BlockSpec(w2_pack.shape, lambda i: (0, 0)),
        ],
        out_specs=pl.BlockSpec((block_b, OUT_W), lambda i: (i, 0)),
        out_shape=jax.ShapeDtypeStruct((b_pad, OUT_W), jnp.float32),
        compiler_params=pltpu.CompilerParams(
            dimension_semantics=("parallel",)),   # batch axis shards over v7x megacore
    )(xa, w1_pack, w2_pack)[:b]

    # --- distribution parameters (same math as the torch module) ---
    mu = fused[:, :NUM_FEAT]
    scale = 1.0 - (1.0 - 0.01) * t * t                                      # (b, 1)
    sigma = scale[:, :, None] * jnp.eye(NUM_FEAT, dtype=jnp.float32)[None]  # (b, F, F)

    if SUM_CAT:
        cat_dists, off = [], NUM_FEAT
        for v in CAT_FEAT:
            cat_dists.append(fused[:, off:off + v])    # already-normalized probs
            off += v
    else:
        cat_dists = False

    tloc = fused[:, D_OUT - 1]                         # res[:, -1]
    if TASK == "regression":
        target = (tloc, scale[:, 0])                   # Normal(loc, scale)
    else:
        target = tloc                                  # Bernoulli(probs)
    return (mu, sigma), cat_dists, target


def _reference(x_t, t, params):
    """Pure-JAX mirror of the torch forward, for correctness checking."""
    w1x, w1t, b1, w2, b2 = params
    h = jnp.tanh(x_t @ w1x + t * w1t + b1)
    res = h @ w2 + b2
    mu = res[:, :NUM_FEAT]
    scale = 1.0 - (1.0 - 0.01) * t ** 2                                # (B,1)
    sigma = scale[:, :, None] * jnp.eye(NUM_FEAT)[None]                # (B,F,F)
    cats, cum = [], NUM_FEAT
    for v in CAT_FEAT:
        sl = res[:, cum:cum + v]
        cats.append(sl / jnp.sum(sl, axis=1, keepdims=True))
        cum += v
    return (mu, sigma), cats, (res[:, -1], scale[:, 0])


if __name__ == "__main__":
    key = jax.random.PRNGKey(0)
    ks = jax.random.split(key, 7)
    # Deterministic synthetic model parameters (no checkpoint loading).
    w1x = 0.3 * jax.random.normal(ks[0], (NUM_FEAT, HIDDEN), jnp.float32)
    w1t = 0.3 * jax.random.normal(ks[1], (1, HIDDEN), jnp.float32)
    b1 = 0.1 * jax.random.normal(ks[2], (1, HIDDEN), jnp.float32)
    w2 = 0.2 * jax.random.normal(ks[3], (HIDDEN, D_OUT), jnp.float32)
    b2 = 0.1 * jax.random.normal(ks[4], (1, D_OUT), jnp.float32)
    # Keep the categorical slice positive (as torch.Categorical(probs=...) expects).
    b2 = b2.at[:, NUM_FEAT:NUM_FEAT + SUM_CAT].add(3.0)
    params = (w1x, w1t, b1, w2, b2)

    x_t = jax.random.normal(ks[5], (B, NUM_FEAT), jnp.float32)
    t = jax.random.uniform(ks[6], (B, 1), jnp.float32)

    (mu, sigma), cat_dists, target = jax.block_until_ready(
        gaussian_multinomial_forward(x_t, t, params))

    # Check against pure-JAX reference.
    (mu_r, sigma_r), cats_r, (loc_r, sc_r) = _reference(x_t, t, params)
    assert jnp.allclose(mu, mu_r, atol=1e-5, rtol=1e-5)
    assert jnp.allclose(sigma, sigma_r, atol=1e-5, rtol=1e-5)
    for c, cr in zip(cat_dists, cats_r):
        assert jnp.allclose(c, cr, atol=1e-5, rtol=1e-5)
    assert jnp.allclose(target[0], loc_r, atol=1e-5, rtol=1e-5)
    assert jnp.allclose(target[1], sc_r, atol=1e-5, rtol=1e-5)

    print("KERNEL_OK")
</pallas_src>

<mosaic_0001>
module attributes {stable_mosaic.version = 11 : i64} {
  func.func @_gm_kernel(%arg0: i32, %arg1: memref<8x6xf32, #tpu.memory_space<vmem>>, %arg2: memref<6x32xf32, #tpu.memory_space<vmem>>, %arg3: memref<33x256xf32, #tpu.memory_space<vmem>>, %arg4: memref<8x128xf32, #tpu.memory_space<vmem>>) attributes {dimension_semantics = [#tpu.dimension_semantics<parallel>], iteration_bounds = array<i64: 1>, scalar_prefetch = 0 : i64, scratch_operands = 0 : i64, tpu.core_type = #tpu.core_type<tc>, window_params = [{transform_indices = @transform_0, window_bounds = array<i64: 8, 6>}, {pipeline_mode = #tpu.pipeline_mode<synchronous>, transform_indices = @transform_1, window_bounds = array<i64: 6, 32>}, {pipeline_mode = #tpu.pipeline_mode<synchronous>, transform_indices = @transform_2, window_bounds = array<i64: 33, 256>}, {transform_indices = @transform_3, window_bounds = array<i64: 8, 128>}]} {
    %c0 = arith.constant 0 : index
    %c0_0 = arith.constant 0 : index
    %0 = vector.load %arg1[%c0, %c0_0] : memref<8x6xf32, #tpu.memory_space<vmem>>, vector<8x6xf32>
    %c0_1 = arith.constant 0 : index
    %c0_2 = arith.constant 0 : index
    %1 = vector.load %arg2[%c0_1, %c0_2] : memref<6x32xf32, #tpu.memory_space<vmem>>, vector<6x32xf32>
    %cst = arith.constant dense<0.000000e+00> : vector<8x32xf32>
    %2 = tpu.matmul %0, %1, %cst {dimension_numbers = #tpu.dot_dimension_numbers<[1], [0], [0], [1], [0, 0, 1, 1], [], []>} : vector<8x6xf32>, vector<6x32xf32>, vector<8x32xf32> -> vector<8x32xf32>
    %3 = math.tanh %2 : vector<8x32xf32>
    %c0_3 = arith.constant 0 : index
    %c0_4 = arith.constant 0 : index
    %4 = vector.load %arg3[%c0_3, %c0_4] : memref<33x256xf32, #tpu.memory_space<vmem>>, vector<32x256xf32>
    %cst_5 = arith.constant dense<0.000000e+00> : vector<8x256xf32>
    %5 = tpu.matmul %3, %4, %cst_5 {dimension_numbers = #tpu.dot_dimension_numbers<[1], [0], [0], [1], [0, 0, 1, 1], [], []>} : vector<8x32xf32>, vector<32x256xf32>, vector<8x256xf32> -> vector<8x256xf32>
    %c32 = arith.constant 32 : index
    %c0_6 = arith.constant 0 : index
    %6 = vector.load %arg3[%c32, %c0_6] : memref<33x256xf32, #tpu.memory_space<vmem>>, vector<1x256xf32>
    %7 = vector.broadcast %6 : vector<1x256xf32> to vector<8x256xf32>
    %8 = arith.addf %5, %7 : vector<8x256xf32>
    %9 = vector.extract_strided_slice %8 {offsets = [0, 0], sizes = [8, 128], strides = [1, 1]} : vector<8x256xf32> to vector<8x128xf32>
    %10 = vector.extract_strided_slice %8 {offsets = [0, 128], sizes = [8, 128], strides = [1, 1]} : vector<8x256xf32> to vector<8x128xf32>
    %11 = arith.divf %9, %10 : vector<8x128xf32>
    %c0_7 = arith.constant 0 : index
    %c0_8 = arith.constant 0 : index
    %12 = vector.load %arg4[%c0_7, %c0_8] : memref<8x128xf32, #tpu.memory_space<vmem>>, vector<8x128xf32>
    tpu.vector_store %arg4[%c0_7, %c0_8], %11 {strides = array<i32>} : memref<8x128xf32, #tpu.memory_space<vmem>>, vector<8x128xf32>,
    return
  }
  func.func @transform_0(%arg0: i32) -> (i32, i32) {
    %c0_i32 = arith.constant 0 : i32
    %c0_i32_0 = arith.constant 0 : i32
    return %arg0, %c0_i32 : i32, i32
  }
  func.func @transform_1(%arg0: i32) -> (i32, i32) {
    %c0_i32 = arith.constant 0 : i32
    %c0_i32_0 = arith.constant 0 : i32
    %c0_i32_1 = arith.constant 0 : i32
    return %c0_i32, %c0_i32_0 : i32, i32
  }
  func.func @transform_2(%arg0: i32) -> (i32, i32) {
    %c0_i32 = arith.constant 0 : i32
    %c0_i32_0 = arith.constant 0 : i32
    %c0_i32_1 = arith.constant 0 : i32
    return %c0_i32, %c0_i32_0 : i32, i32
  }
  func.func @transform_3(%arg0: i32) -> (i32, i32) {
    %c0_i32 = arith.constant 0 : i32
    %c0_i32_0 = arith.constant 0 : i32
    return %arg0, %c0_i32 : i32, i32
  }
}

</mosaic_0001>

<bundles_post_ra>
// kernel: tpu_custom_call.1
= control target key start
LH: loop header
LB: loop body
LE: loop exit
PB: predicated region body
PF: predicated region fallthrough
CT: control target
= control target key end

     0   :  { %8 = vsyncpa [#allocation3], 0  ;;  %s336_s0 = inlined_call_operand.hbm [shape: f32[8,6], index: 0, kind: input, shape index: {}]   ;;  %s337_s1 = inlined_call_operand.hbm [shape: f32[6,32], index: 1, kind: input, shape index: {}]   ;;  %s338_s2 = inlined_call_operand.hbm [shape: f32[33,256], index: 2, kind: input, shape index: {}]   ;;  %s339_s3 = inlined_call_operand.hbm [shape: f32[8,128], index: 3, kind: output, shape index: {}]  }
   0x1   :  { %9 = vsyncpa [#allocation6], 0  ;;  %s27_s14 = sshll.u32 %s337_s1, 4  ;;  %s28_s14 = int_to_ptr.hbm [resolvable:$true] %s27_s14 }
   0x2   :  { %10 = vsyncpa [#allocation4], 0  ;;  %s298_s15 = smov [#allocation5]   ;;  %s16_s19 = sshll.u32 %s336_s0, 4  ;;  %s17_s19 = int_to_ptr.hbm [resolvable:$true] %s16_s19 }
   0x3   :  { %s29_s16 = sshll.u32 %s298_s15, 4  ;;  %s299_s20 = smov [#allocation2]   ;;  %s30_s16 = int_to_ptr.vmem [resolvable:$true] %s29_s16 }
   0x4   :  { %32 = dma.hbm_to_vmem [thread:$0]  %s28_s14, 128, %s30_s16, [#allocation6]  }
   0x5   :  { %s18_s21 = sshll.u32 %s299_s20, 4  ;;  %s37_s24 = sshll.u32 %s338_s2, 4  ;;  %s19_s21 = int_to_ptr.vmem [resolvable:$true] %s18_s21  ;;  %s38_s24 = int_to_ptr.hbm [resolvable:$true] %s37_s24 }
   0x6   :  { %21 = dma.hbm_to_vmem [thread:$0]  %s17_s19, 128, %s19_s21, [#allocation3]  }
   0x7   :  { %s300_s1 = smov [#allocation7]   ;;  %s301_s26 = smov 256  }
   0x8   :  { %s39_s25 = sshll.u32 %s300_s1, 4  ;;  %s302_s27 = smov 16   ;;  %s40_s25 = int_to_ptr.vmem [resolvable:$true] %s39_s25 }
   0x9   :  { %45 = dma.hbm_to_vmem [thread:$0]  %s38_s24, 1280, %s40_s25, [#allocation6], %s301_s26, %s301_s26, %s302_s27  }
   0xa   :  { %292 = dma.done.wait [#allocation3], 128  }
   0xb   :  { %293 = vsyncadd [#allocation3], 4294967168 }
   0xc   :  { %294 = dma.done.wait [#allocation6], 1408  }
   0xd   :  { %295 = vsyncadd [#allocation6], 4294965888  ;;  %vm64_vm0 = vcmask 1045504   ;;  %vm60_vm1 = vcmask 48128   ;;  %v59_v0 = vld [vmem:[#allocation5] sm:$0x3f] }
   0xe   :  { %v58_v1 = vld [vmem:[#allocation2] sm:$0xff]  ;;  %182 = vmatpush.msk.msra.mxu0 %vm64_vm0, %v59_v0  ;;  %v96_v3 = vld [vmem:[#allocation7 + $0x38] sm:$0xff]  ;;  %v93_v4 = vld [vmem:[#allocation7 + $0x20] sm:$0xff]  ;;  %vm104_vm2 = vcmask 261120   ;;  %s303_s0 = smov [#allocation8]   ;;  %s171_s30 = sshll.u32 %s339_s3, 4  ;;  %s172_s30 = int_to_ptr.hbm [resolvable:$true] %s171_s30 }
   0xf   :  { %183 = vmatmul.msk.f32.vlgmr.msra.gmra.mxu0 %vm60_vm1, %v58_v1  ;;  %v95_v2 = vld [vmem:[#allocation7 + $0x30] sm:$0xff]  ;;  %140 = vmatpush.msra.mxu2 %v96_v3  ;;  %v94_v5 = vld [vmem:[#allocation7 + $0x28] sm:$0xff]  ;;  %v92_v7 = vld [vmem:[#allocation7 + $0x18] sm:$0xff]  ;;  %s169_s2 = sshll.u32 %s303_s0, 4  ;;  %s170_s2 = int_to_ptr.vmem [resolvable:$true] %s169_s2 }
  0x10   :  { %120 = vmatpush.msra.mxu1 %v95_v2  ;;  %v91_v6 = vld [vmem:[#allocation7 + $0x10] sm:$0xff]  ;;  %v89_v8 = vld [vmem:[#allocation7] sm:$0xff]  ;;  %v90_v9 = vld [vmem:[#allocation7 + $0x8] sm:$0xff] }
  0x11   :  { %141 = vmatpush.msra.mxu2 %v94_v5  ;;  %v98_v12 = vld [vmem:[#allocation7 + $0x40] ss:$8 sm:$0x3] }
  0x12   :  { %121 = vmatpush.msra.mxu1 %v93_v4  ;;  %v101_v13 = vperm.slane %v98_v12, 1  ;;  %v100_v20 = vperm.slane %v98_v12, 0 }
  0x13   :  { %142 = vmatpush.msra.mxu2 %v92_v7 }
  0x14   :  { %122 = vmatpush.msra.mxu1 %v91_v6 }
  0x15   :  { %143 = vmatpush.msra.mxu2 %v90_v9 }
  0x16   :  { %123 = vmatpush.msra.mxu1 %v89_v8 }
  0x8c   :  { %v85_v10 = vpop.f32.mrf.mxu0 }
  0x8d   :  { %192 = vtanh.f32 %v85_v10 }
  0x93   :  { %v193_v11 = vpop.eup %192 }
  0x94   :  { %184 = vmatmul.msk.f32.vlgmr.msra.gmra.mxu1 %vm104_vm2, %v193_v11  ;;  %185 = vmatmul.msk.f32.vlgmr.msra.gmra.mxu2 %vm104_vm2, %v193_v11 }
 0x111   :  { %v125_v23 = vpop.f32.mrf.mxu1 }
 0x112   :  { %v126_v26 = vadd.f32 %v125_v23, %v100_v20 }
 0x117   :  { %v145_v14 = vpop.f32.mrf.mxu2 }
 0x118   :  { %v146_v15 = vadd.f32 %v145_v14, %v101_v13 }
 0x11a   :  { %194 = vrcp.f32 %v146_v15  ;;  %v159_v19 = vand.u32 2147483648, %v146_v15  ;;  %v157_v22 = vand.u32 2147483647, %v146_v15  ;;  %vm153_vm4 = vweird.f32 %v146_v15 }
 0x11c   :  { %v160_v25 = vor.u32 1.1754944e-38, %v159_v19  ;;  %vm158_vm6 = vcmp.eq.f32.partialorder %v157_v22, 8.507059e+37 }
 0x120   :  { %v195_v16 = vpop.eup %194 }
 0x121   :  { %v149_v17 = vmul.f32 %v195_v16, %v146_v15  ;;  %vm154_vm3 = vweird.f32 %v195_v16 }
 0x122   :  { %vm155_vm5 = vmor %vm153_vm4, %vm154_vm3 }
 0x123   :  { %v150_v18 = vsub.f32 1.0, %v149_v17 }
 0x125   :  { %v151_v21 = vmul.f32 %v195_v16, %v150_v18 }
 0x127   :  { %v152_v24 = vadd.f32 %v195_v16, %v151_v21 }
 0x129   :  { %v156_v27 = vsel %vm155_vm5, %v195_v16, %v152_v24 }
 0x12a   :  { %v161_v28 = vsel %vm158_vm6, %v160_v25, %v156_v27 }
 0x12b   :  { %v162_v29 = vmul.f32 %v161_v28, %v126_v26 }
 0x12d   :  { %163 = vst [vmem:[#allocation8] sm:$0xff] %v162_v29 }
 0x12e   :  { %174 = dma.vmem_to_hbm [thread:$0]  %s170_s2, 128, %s172_s30, [#allocation4]  }
 0x12f   :  { %296 = dma.done.wait [#allocation4], 128  }
 0x130   :  { %297 = vsyncadd [#allocation4], 4294967168 }
 0x131   :  { %179 = vsyncpa [#allocation3], 1 }
 0x132   :  { %180 = vsyncpa [#allocation6], 1 }
 0x133   :  { %181 = vsyncpa [#allocation4], 1 }

</bundles_post_ra>
